<compile_context>
chip_gen: v7x
topology: tpu7x:2x2x1
jax: 0.10.0
libtpu: 0.0.40
codegen_flags: <defaults>
</compile_context>

<pallas_src>
import jax
import jax.numpy as jnp
from jax import lax
from jax.experimental import pallas as pl
from jax.experimental.pallas import tpu as pltpu

_LANE = 128
_MASK_VALUE = -1000000.0  # matches the PyTorch reference's masking value


def _round_up(x, m):
    return ((x + m - 1) // m) * m


def _additive_attention_kernel(q_ref, k_ref, v_ref, vl_ref,
                               wq_ref, wk_ref, wv_ref,
                               out_ref, attn_ref):
    bt, q_len, dq_p = q_ref.shape
    _, k_len, dk_p = k_ref.shape
    hp = wq_ref.shape[1]

    # ---- Linear projections: fold the whole batch tile into the MXU M dim.
    q2 = q_ref[...].reshape(bt * q_len, dq_p)                            # (Bt*Q, Dq_p)
    k2 = k_ref[...].reshape(bt * k_len, dk_p)                            # (Bt*K, Dk_p)
    qp = jnp.dot(q2, wq_ref[...], preferred_element_type=jnp.float32)    # (Bt*Q, Hp)
    kp = jnp.dot(k2, wk_ref[...], preferred_element_type=jnp.float32)    # (Bt*K, Hp)

    # ---- Additive features.  Hp is padded to a multiple of 128 in the wrapper,
    # so the tanh slab is lane dense.
    feat = jnp.tanh(qp.reshape(bt, q_len, 1, hp) +
                    kp.reshape(bt, 1, k_len, hp))                        # (Bt, Q, K, Hp)

    # ---- scores[b, q, k] = sum_h feat[b, q, k, h] * wv[h]
    # VPU multiply + lane reduce; padded H columns of wv are zero, so the
    # padding contributes nothing.  (See header for why this is not an MXU dot.)
    wv4 = wv_ref[...].reshape(1, 1, 1, hp)
    scores = jnp.sum(feat * wv4, axis=-1)                                # (Bt, Q, K)

    # ---- masked softmax over the key axis (PyTorch masks with -1e6).
    valid = vl_ref[...]                                                  # (Bt, 1 or Q, 1)
    k_idx = lax.broadcasted_iota(jnp.int32, scores.shape, 2)
    scores = jnp.where(k_idx < valid, scores, jnp.float32(_MASK_VALUE))

    m = jnp.max(scores, axis=-1, keepdims=True)
    e = jnp.exp(scores - m)
    denom = jnp.sum(e, axis=-1, keepdims=True)
    attn = e * pl.reciprocal(denom, approx=True)                         # (Bt, Q, K)

    # TODO(synk): nn.Dropout on the attention weights is identity in eval mode;
    # training-mode dropout is not applied here.

    attn_ref[...] = attn
    out_ref[...] = jnp.einsum("bqk,bkd->bqd", attn, v_ref[...],
                              preferred_element_type=jnp.float32)        # (Bt, Q, Dv_p)


def additive_attention(queries, keys, values, valid_lens, wq, wk, wv,
                       *, batch_tile=None):
    """
    queries: (B, Q, Dq) f32   keys: (B, K, Dk) f32   values: (B, K, Dv) f32
    valid_lens: None, (B,) or (B, Q) int
    wq: (Dq, H)  wk: (Dk, H)  wv: (1, H)   (pre-transposed nn.Linear weights)
    Returns (output, attention_weights): (B, Q, Dv), (B, Q, K)
    """
    B, Q, Dq = queries.shape
    _, K, Dk = keys.shape
    _, _, Dv = values.shape
    H = wq.shape[1]
    f32 = jnp.float32

    Dq_p, Dk_p, H_p, Dv_p = (_round_up(d, _LANE) for d in (Dq, Dk, H, Dv))

    # ---- Wrapper-side zero padding so every lane (minor) dim is a multiple of
    # 128.  Exact: padded Dq/Dk columns hit zero weight rows, padded H columns
    # give tanh(0) * 0, padded Dv columns are sliced away at the end.
    q_p = jnp.pad(queries.astype(f32), ((0, 0), (0, 0), (0, Dq_p - Dq)))
    k_p = jnp.pad(keys.astype(f32), ((0, 0), (0, 0), (0, Dk_p - Dk)))
    v_p = jnp.pad(values.astype(f32), ((0, 0), (0, 0), (0, Dv_p - Dv)))
    wq_p = jnp.pad(wq.astype(f32), ((0, Dq_p - Dq), (0, H_p - H)))
    wk_p = jnp.pad(wk.astype(f32), ((0, Dk_p - Dk), (0, H_p - H)))
    wv_p = jnp.pad(wv.astype(f32), ((0, 0), (0, H_p - H)))

    # ---- valid_lens: None / (B,) / (B, Q) are all supported.
    if valid_lens is None:
        vl = jnp.full((B, 1, 1), K, dtype=jnp.int32)
    elif valid_lens.ndim == 1:
        vl = valid_lens.astype(jnp.int32).reshape(B, 1, 1)
    else:
        vl = valid_lens.astype(jnp.int32).reshape(B, Q, 1)
    VQ = vl.shape[1]

    # ---- Batch tile: fold several batch elements into one grid step so the
    # projection matmuls see a big M dim, while keeping the f32 (Bt, Q, K, Hp)
    # feature slab comfortably inside scoped VMEM.
    if batch_tile is None:
        feat_budget = 8 * 1024 * 1024                       # bytes for the slab
        per_b = 4 * Q * K * H_p
        bt = max(1, min(B, feat_budget // per_b, max(1, 1024 // max(Q, 1))))
        while B % bt:
            bt -= 1
        batch_tile = bt
    Bt = batch_tile
    assert B % Bt == 0, "batch_tile must divide the batch size"
    grid = (B // Bt,)

    # Rough per-step VMEM footprint: double-buffered blocks + feature slab.
    blk_bytes = 4 * (Bt * Q * Dq_p + Bt * K * Dk_p + Bt * K * Dv_p + Bt * VQ
                     + Dq_p * H_p + Dk_p * H_p + H_p
                     + Bt * Q * Dv_p + Bt * Q * K)
    feat_bytes = 4 * Bt * Q * K * H_p
    vmem_limit = int(min(64 * 1024 * 1024,
                         max(32 * 1024 * 1024, 2 * blk_bytes + 4 * feat_bytes)))

    grid_spec = pltpu.PrefetchScalarGridSpec(
        num_scalar_prefetch=0,
        grid=grid,
        in_specs=[
            pl.BlockSpec((Bt, Q, Dq_p), lambda b: (b, 0, 0)),
            pl.BlockSpec((Bt, K, Dk_p), lambda b: (b, 0, 0)),
            pl.BlockSpec((Bt, K, Dv_p), lambda b: (b, 0, 0)),
            pl.BlockSpec((Bt, VQ, 1),   lambda b: (b, 0, 0)),
            pl.BlockSpec((Dq_p, H_p),   lambda b: (0, 0)),
            pl.BlockSpec((Dk_p, H_p),   lambda b: (0, 0)),
            pl.BlockSpec((1, H_p),      lambda b: (0, 0)),
        ],
        out_specs=[
            pl.BlockSpec((Bt, Q, Dv_p), lambda b: (b, 0, 0)),
            pl.BlockSpec((Bt, Q, K),    lambda b: (b, 0, 0)),
        ],
    )

    out_p, attn = pl.pallas_call(
        _additive_attention_kernel,
        out_shape=(
            jax.ShapeDtypeStruct((B, Q, Dv_p), f32),
            jax.ShapeDtypeStruct((B, Q, K), f32),
        ),
        grid_spec=grid_spec,
        compiler_params=pltpu.CompilerParams(
            dimension_semantics=("parallel",),   # batch tiles are independent
            vmem_limit_bytes=vmem_limit,
        ),
    )(q_p, k_p, v_p, vl, wq_p, wk_p, wv_p)

    return out_p[:, :, :Dv], attn


def _reference(queries, keys, values, valid_lens, wq, wk, wv):
    qp = queries @ wq                       # (B, Q, H)
    kp = keys @ wk                          # (B, K, H)
    feat = jnp.tanh(qp[:, :, None, :] + kp[:, None, :, :])
    scores = jnp.einsum("bqkh,h->bqk", feat, wv[0])
    if valid_lens is not None:
        k_idx = jnp.arange(scores.shape[-1])[None, None, :]
        if valid_lens.ndim == 1:
            mask = k_idx < valid_lens[:, None, None]
        else:
            mask = k_idx < valid_lens[:, :, None]
        scores = jnp.where(mask, scores, _MASK_VALUE)
    attn = jax.nn.softmax(scores, axis=-1)
    return jnp.einsum("bqk,bkd->bqd", attn, values), attn


if __name__ == "__main__":
    B, Q, K = 2, 8, 8
    query_size, key_size, hidden_size, value_dim = 32, 16, 32, 24

    root = jax.random.PRNGKey(0)
    k1, k2, k3, k4, k5, k6 = jax.random.split(root, 6)

    queries = jax.random.normal(k1, (B, Q, query_size), dtype=jnp.float32)
    keys = jax.random.normal(k2, (B, K, key_size), dtype=jnp.float32)
    values = jax.random.normal(k3, (B, K, value_dim), dtype=jnp.float32)
    valid_lens = jnp.array([3, 6], dtype=jnp.int32)

    # Deterministic parameter init (nn.Linear weights, stored pre-transposed).
    wq = (jax.random.normal(k4, (query_size, hidden_size), dtype=jnp.float32)
          * (1.0 / jnp.sqrt(query_size)))
    wk = (jax.random.normal(k5, (key_size, hidden_size), dtype=jnp.float32)
          * (1.0 / jnp.sqrt(key_size)))
    wv = (jax.random.normal(k6, (1, hidden_size), dtype=jnp.float32)
          * (1.0 / jnp.sqrt(hidden_size)))

    out, attn = additive_attention(queries, keys, values, valid_lens, wq, wk, wv)
    out = jax.block_until_ready(out)
    attn = jax.block_until_ready(attn)

    ref_out, ref_attn = _reference(queries, keys, values, valid_lens, wq, wk, wv)
    assert out.shape == (B, Q, value_dim) and attn.shape == (B, Q, K)
    # Tolerances sized for the approximate EUP reciprocal in the softmax
    # normalization (~1e-4 relative error); real bugs blow far past this.
    assert jnp.allclose(out, ref_out, atol=2e-3, rtol=2e-3)
    assert jnp.allclose(attn, ref_attn, atol=2e-3, rtol=2e-3)

    print("KERNEL_OK")
</pallas_src>

<mosaic_0001>
module attributes {stable_mosaic.version = 11 : i64} {
  func.func @_additive_attention_kernel(%arg0: i32, %arg1: memref<2x8x128xf32, #tpu.memory_space<vmem>>, %arg2: memref<2x8x128xf32, #tpu.memory_space<vmem>>, %arg3: memref<2x8x128xf32, #tpu.memory_space<vmem>>, %arg4: memref<2x1x1xi32, #tpu.memory_space<vmem>>, %arg5: memref<128x128xf32, #tpu.memory_space<vmem>>, %arg6: memref<128x128xf32, #tpu.memory_space<vmem>>, %arg7: memref<1x128xf32, #tpu.memory_space<vmem>>, %arg8: memref<2x8x128xf32, #tpu.memory_space<vmem>>, %arg9: memref<2x8x8xf32, #tpu.memory_space<vmem>>) attributes {dimension_semantics = [#tpu.dimension_semantics<parallel>], iteration_bounds = array<i64: 1>, scalar_prefetch = 0 : i64, scratch_operands = 0 : i64, tpu.core_type = #tpu.core_type<tc>, window_params = [{transform_indices = @transform_0, window_bounds = array<i64: 2, 8, 128>}, {transform_indices = @transform_1, window_bounds = array<i64: 2, 8, 128>}, {transform_indices = @transform_2, window_bounds = array<i64: 2, 8, 128>}, {transform_indices = @transform_3, window_bounds = array<i64: 2, 1, 1>}, {pipeline_mode = #tpu.pipeline_mode<synchronous>, transform_indices = @transform_4, window_bounds = array<i64: 128, 128>}, {pipeline_mode = #tpu.pipeline_mode<synchronous>, transform_indices = @transform_5, window_bounds = array<i64: 128, 128>}, {pipeline_mode = #tpu.pipeline_mode<synchronous>, transform_indices = @transform_6, window_bounds = array<i64: 1, 128>}, {transform_indices = @transform_7, window_bounds = array<i64: 2, 8, 128>}, {transform_indices = @transform_8, window_bounds = array<i64: 2, 8, 8>}]} {
    %c0 = arith.constant 0 : index
    %c0_0 = arith.constant 0 : index
    %c0_1 = arith.constant 0 : index
    %0 = vector.load %arg1[%c0, %c0_0, %c0_1] : memref<2x8x128xf32, #tpu.memory_space<vmem>>, vector<2x8x128xf32>
    %1 = vector.shape_cast %0 : vector<2x8x128xf32> to vector<16x128xf32>
    %c0_2 = arith.constant 0 : index
    %c0_3 = arith.constant 0 : index
    %c0_4 = arith.constant 0 : index
    %2 = vector.load %arg2[%c0_2, %c0_3, %c0_4] : memref<2x8x128xf32, #tpu.memory_space<vmem>>, vector<2x8x128xf32>
    %3 = vector.shape_cast %2 : vector<2x8x128xf32> to vector<16x128xf32>
    %c0_5 = arith.constant 0 : index
    %c0_6 = arith.constant 0 : index
    %4 = vector.load %arg5[%c0_5, %c0_6] : memref<128x128xf32, #tpu.memory_space<vmem>>, vector<128x128xf32>
    %cst = arith.constant dense<0.000000e+00> : vector<16x128xf32>
    %5 = tpu.matmul %1, %4, %cst {dimension_numbers = #tpu.dot_dimension_numbers<[1], [0], [0], [1], [0, 0, 1, 1], [], []>} : vector<16x128xf32>, vector<128x128xf32>, vector<16x128xf32> -> vector<16x128xf32>
    %c0_7 = arith.constant 0 : index
    %c0_8 = arith.constant 0 : index
    %6 = vector.load %arg6[%c0_7, %c0_8] : memref<128x128xf32, #tpu.memory_space<vmem>>, vector<128x128xf32>
    %cst_9 = arith.constant dense<0.000000e+00> : vector<16x128xf32>
    %7 = tpu.matmul %3, %6, %cst_9 {dimension_numbers = #tpu.dot_dimension_numbers<[1], [0], [0], [1], [0, 0, 1, 1], [], []>} : vector<16x128xf32>, vector<128x128xf32>, vector<16x128xf32> -> vector<16x128xf32>
    %8 = vector.shape_cast %5 : vector<16x128xf32> to vector<2x8x1x128xf32>
    %9 = vector.shape_cast %7 : vector<16x128xf32> to vector<2x1x8x128xf32>
    %10 = vector.broadcast %8 : vector<2x8x1x128xf32> to vector<2x8x8x128xf32>
    %11 = vector.broadcast %9 : vector<2x1x8x128xf32> to vector<2x8x8x128xf32>
    %12 = arith.addf %10, %11 : vector<2x8x8x128xf32>
    %13 = math.tanh %12 : vector<2x8x8x128xf32>
    %c0_10 = arith.constant 0 : index
    %c0_11 = arith.constant 0 : index
    %14 = vector.load %arg7[%c0_10, %c0_11] : memref<1x128xf32, #tpu.memory_space<vmem>>, vector<1x128xf32>
    %15 = vector.shape_cast %14 : vector<1x128xf32> to vector<1x1x1x128xf32>
    %16 = vector.broadcast %15 : vector<1x1x1x128xf32> to vector<2x8x8x128xf32>
    %17 = arith.mulf %13, %16 : vector<2x8x8x128xf32>
    %cst_12 = arith.constant dense<0.000000e+00> : vector<2x8x8xf32>
    %18 = vector.multi_reduction <add>, %17, %cst_12 [3] : vector<2x8x8x128xf32> to vector<2x8x8xf32>
    %c0_13 = arith.constant 0 : index
    %c0_14 = arith.constant 0 : index
    %c0_15 = arith.constant 0 : index
    %19 = vector.load %arg4[%c0_13, %c0_14, %c0_15] : memref<2x1x1xi32, #tpu.memory_space<vmem>>, vector<2x1x1xi32>
    %20 = tpu.iota {dimensions = array<i32: 2>} : vector<2x8x8xi32>
    %21 = vector.broadcast %19 : vector<2x1x1xi32> to vector<2x8x8xi32>
    %22 = arith.cmpi slt, %20, %21 : vector<2x8x8xi32>
    %cst_16 = arith.constant -1.000000e+06 : f32
    %23 = vector.broadcast %cst_16 : f32 to vector<2x8x8xf32>
    %24 = arith.select %22, %18, %23 : vector<2x8x8xi1>, vector<2x8x8xf32>
    %cst_17 = arith.constant dense<0xFF800000> : vector<2x8xf32>
    %25 = vector.multi_reduction <maximumf>, %24, %cst_17 [2] : vector<2x8x8xf32> to vector<2x8xf32>
    %26 = vector.shape_cast %25 : vector<2x8xf32> to vector<2x8x1xf32>
    %27 = vector.broadcast %26 : vector<2x8x1xf32> to vector<2x8x8xf32>
    %28 = arith.subf %24, %27 : vector<2x8x8xf32>
    %29 = math.exp %28 : vector<2x8x8xf32>
    %cst_18 = arith.constant dense<0.000000e+00> : vector<2x8xf32>
    %30 = vector.multi_reduction <add>, %29, %cst_18 [2] : vector<2x8x8xf32> to vector<2x8xf32>
    %31 = vector.shape_cast %30 : vector<2x8xf32> to vector<2x8x1xf32>
    %32 = tpu.reciprocal %31 {approx = true} : vector<2x8x1xf32> -> vector<2x8x1xf32>
    %33 = vector.broadcast %32 : vector<2x8x1xf32> to vector<2x8x8xf32>
    %34 = arith.mulf %29, %33 : vector<2x8x8xf32>
    %c0_19 = arith.constant 0 : index
    %c0_20 = arith.constant 0 : index
    %c0_21 = arith.constant 0 : index
    %35 = vector.load %arg9[%c0_19, %c0_20, %c0_21] : memref<2x8x8xf32, #tpu.memory_space<vmem>>, vector<2x8x8xf32>
    tpu.vector_store %arg9[%c0_19, %c0_20, %c0_21], %34 {strides = array<i32>} : memref<2x8x8xf32, #tpu.memory_space<vmem>>, vector<2x8x8xf32>,
    %c0_22 = arith.constant 0 : index
    %c0_23 = arith.constant 0 : index
    %c0_24 = arith.constant 0 : index
    %36 = vector.load %arg3[%c0_22, %c0_23, %c0_24] : memref<2x8x128xf32, #tpu.memory_space<vmem>>, vector<2x8x128xf32>
    "tpu.trace_start"() <{level = 10 : i32, message = "bqk,bkd->bqd"}> : () -> ()
    %cst_25 = arith.constant dense<0.000000e+00> : vector<2x8x128xf32>
    %37 = tpu.matmul %34, %36, %cst_25 {dimension_numbers = #tpu.dot_dimension_numbers<[2], [1], [1], [2], [0, 0, 0, 1, 1, 2], [0], [0]>} : vector<2x8x8xf32>, vector<2x8x128xf32>, vector<2x8x128xf32> -> vector<2x8x128xf32>
    "tpu.trace_stop"() : () -> ()
    %c0_26 = arith.constant 0 : index
    %c0_27 = arith.constant 0 : index
    %c0_28 = arith.constant 0 : index
    %38 = vector.load %arg8[%c0_26, %c0_27, %c0_28] : memref<2x8x128xf32, #tpu.memory_space<vmem>>, vector<2x8x128xf32>
    tpu.vector_store %arg8[%c0_26, %c0_27, %c0_28], %37 {strides = array<i32>} : memref<2x8x128xf32, #tpu.memory_space<vmem>>, vector<2x8x128xf32>,
    return
  }
  func.func @transform_0(%arg0: i32) -> (i32, i32, i32) {
    %c0_i32 = arith.constant 0 : i32
    %c0_i32_0 = arith.constant 0 : i32
    %c0_i32_1 = arith.constant 0 : i32
    return %arg0, %c0_i32, %c0_i32_0 : i32, i32, i32
  }
  func.func @transform_1(%arg0: i32) -> (i32, i32, i32) {
    %c0_i32 = arith.constant 0 : i32
    %c0_i32_0 = arith.constant 0 : i32
    %c0_i32_1 = arith.constant 0 : i32
    return %arg0, %c0_i32, %c0_i32_0 : i32, i32, i32
  }
  func.func @transform_2(%arg0: i32) -> (i32, i32, i32) {
    %c0_i32 = arith.constant 0 : i32
    %c0_i32_0 = arith.constant 0 : i32
    %c0_i32_1 = arith.constant 0 : i32
    return %arg0, %c0_i32, %c0_i32_0 : i32, i32, i32
  }
  func.func @transform_3(%arg0: i32) -> (i32, i32, i32) {
    %c0_i32 = arith.constant 0 : i32
    %c0_i32_0 = arith.constant 0 : i32
    %c0_i32_1 = arith.constant 0 : i32
    return %arg0, %c0_i32, %c0_i32_0 : i32, i32, i32
  }
  func.func @transform_4(%arg0: i32) -> (i32, i32) {
    %c0_i32 = arith.constant 0 : i32
    %c0_i32_0 = arith.constant 0 : i32
    %c0_i32_1 = arith.constant 0 : i32
    return %c0_i32, %c0_i32_0 : i32, i32
  }
  func.func @transform_5(%arg0: i32) -> (i32, i32) {
    %c0_i32 = arith.constant 0 : i32
    %c0_i32_0 = arith.constant 0 : i32
    %c0_i32_1 = arith.constant 0 : i32
    return %c0_i32, %c0_i32_0 : i32, i32
  }
  func.func @transform_6(%arg0: i32) -> (i32, i32) {
    %c0_i32 = arith.constant 0 : i32
    %c0_i32_0 = arith.constant 0 : i32
    %c0_i32_1 = arith.constant 0 : i32
    return %c0_i32, %c0_i32_0 : i32, i32
  }
  func.func @transform_7(%arg0: i32) -> (i32, i32, i32) {
    %c0_i32 = arith.constant 0 : i32
    %c0_i32_0 = arith.constant 0 : i32
    %c0_i32_1 = arith.constant 0 : i32
    return %arg0, %c0_i32, %c0_i32_0 : i32, i32, i32
  }
  func.func @transform_8(%arg0: i32) -> (i32, i32, i32) {
    %c0_i32 = arith.constant 0 : i32
    %c0_i32_0 = arith.constant 0 : i32
    %c0_i32_1 = arith.constant 0 : i32
    return %arg0, %c0_i32, %c0_i32_0 : i32, i32, i32
  }
}

</mosaic_0001>

<bundles_post_ra>
// kernel: tpu_custom_call.1
= control target key start
LH: loop header
LB: loop body
LE: loop exit
PB: predicated region body
PF: predicated region fallthrough
CT: control target
= control target key end

     0   :  { %14 = vsyncpa [#allocation3], 0  ;;  %s1509_s0 = inlined_call_operand.hbm [shape: f32[2,8,128], index: 0, kind: input, shape index: {}]   ;;  %s1510_s1 = inlined_call_operand.hbm [shape: f32[2,8,128], index: 1, kind: input, shape index: {}]   ;;  %s1511_s2 = inlined_call_operand.hbm [shape: f32[2,8,128], index: 2, kind: input, shape index: {}]   ;;  %s1512_s3 = inlined_call_operand.vmem [shape: s32[2,1,1], index: 3, kind: input, shape index: {}]   ;;  %s1513_s4 = inlined_call_operand.hbm [shape: f32[128,128], index: 4, kind: input, shape index: {}]   ;;  %s1514_s5 = inlined_call_operand.hbm [shape: f32[128,128], index: 5, kind: input, shape index: {}]   ;;  %s1515_s6 = inlined_call_operand.vmem [shape: f32[1,128], index: 6, kind: input, shape index: {}]   ;;  %s1516_s7 = inlined_call_operand.hbm [shape: f32[2,8,128], index: 7, kind: output, shape index: {0}]   ;;  %s1517_s8 = inlined_call_operand.hbm [shape: f32[2,8,8], index: 8, kind: output, shape index: {1}]  }
   0x1   :  { %15 = vsyncpa [#allocation6], 0 }
   0x2   :  { %16 = vsyncpa [#allocation9], 0 }
   0x3   :  { %17 = vsyncpa [#allocation4], 0 }
   0x4   :  { %18 = vsyncpa [#allocation13], 0  ;;  %s1294_s27 = smov [#allocation5]   ;;  %s1295_s29 = smov [#allocation8]  }
   0x5   :  { %s36_s28 = sshll.u32 %s1294_s27, 4  ;;  %s62_s30 = sshll.u32 %s1295_s29, 4  ;;  %s37_s28 = int_to_ptr.vmem [resolvable:$true] %s36_s28  ;;  %s1352_s30 = int_to_ptr.vmem [resolvable:$true] %s62_s30 }
   0x6   :  { %s1130_s11 = scalar_lea.hbm %s1510_s1, 256 }
   0x7   :  { %p1131_p0 = scmp.ne.s32.totalorder %s1510_s1, %s1130_s11  ;;  %p1134_p1 = scmp.lt.u32.totalorder %s1130_s11, %s1510_s1 }
   0x9   :  { %p1136_p2 = pnand %p1134_p1, %p1131_p0 }
   0xb   :  { %1139 = shalt.err (!%p1136_p2)
}
   0xc   :  { %s1140_s16 = scalar_lea.vmem %s37_s28, 256  ;;  %p1145_p4 = scmp.lt.s32.totalorder %s37_s28, %s37_s28 }
   0xd   :  { %p1141_p3 = scmp.ne.s32.totalorder %s37_s28, %s1140_s16  ;;  %p1146_p5 = scmp.lt.s32.totalorder %s1140_s16, %s1140_s16 }
   0xf   :  { %p1147_p6 = por %p1146_p5, %p1145_p4 }
  0x11   :  { %p1148_p7 = pnand %p1147_p6, %p1141_p3 }
  0x13   :  { %1151 = shalt.err (!%p1148_p7)
}
  0x14   :  { %s1296_s17 = smov 128   ;;  %s1297_s18 = smov 8  }
  0x15   :  { %42 = dma.hbm_to_vmem [thread:$0]  %s1510_s1, 256, %s37_s28, [#allocation6], %s1296_s17, %s1296_s17, %s1297_s18  }
  0x16   :  { %s1152_s23 = scalar_lea.hbm %s1513_s4, 2048 }
  0x17   :  { %p1153_p8 = scmp.ne.s32.totalorder %s1513_s4, %s1152_s23  ;;  %p1156_p9 = scmp.lt.u32.totalorder %s1152_s23, %s1513_s4 }
  0x19   :  { %p1158_p10 = pnand %p1156_p9, %p1153_p8 }
  0x1b   :  { %1161 = shalt.err (!%p1158_p10)
}
  0x1c   :  { %s1162_s29 = scalar_lea.vmem %s1352_s30, 2048  ;;  %p1167_p12 = scmp.lt.s32.totalorder %s1352_s30, %s1352_s30 }
  0x1d   :  { %p1163_p11 = scmp.ne.s32.totalorder %s1352_s30, %s1162_s29  ;;  %p1168_p13 = scmp.lt.s32.totalorder %s1162_s29, %s1162_s29 }
  0x1f   :  { %p1169_p0 = por %p1168_p13, %p1167_p12 }
  0x21   :  { %p1170_p1 = pnand %p1169_p0, %p1163_p11 }
  0x23   :  { %1173 = shalt.err (!%p1170_p1)
}
  0x24   :  { %68 = dma.hbm_to_vmem [thread:$0]  %s1513_s4, 2048, %s1352_s30, [#allocation9], %s1296_s17, %s1296_s17, %s1297_s18  }
  0x25   :  { %s1298_s9 = smov [#allocation2]   ;;  %s1299_s11 = smov [#allocation7]  }
  0x26   :  { %s24_s10 = sshll.u32 %s1298_s9, 4  ;;  %s48_s12 = sshll.u32 %s1299_s11, 4  ;;  %s25_s10 = int_to_ptr.vmem [resolvable:$true] %s24_s10  ;;  %s1389_s12 = int_to_ptr.vmem [resolvable:$true] %s48_s12 }
  0x27   :  { %s1174_s15 = scalar_lea.hbm %s1509_s0, 256 }
  0x28   :  { %p1175_p2 = scmp.ne.s32.totalorder %s1509_s0, %s1174_s15  ;;  %p1178_p3 = scmp.lt.u32.totalorder %s1174_s15, %s1509_s0 }
  0x2a   :  { %p1180_p4 = pnand %p1178_p3, %p1175_p2 }
  0x2c   :  { %1183 = shalt.err (!%p1180_p4)
}
  0x2d   :  { %s1184_s4 = scalar_lea.vmem %s25_s10, 256  ;;  %p1189_p6 = scmp.lt.s32.totalorder %s25_s10, %s25_s10 }
  0x2e   :  { %p1185_p5 = scmp.ne.s32.totalorder %s25_s10, %s1184_s4  ;;  %p1190_p7 = scmp.lt.s32.totalorder %s1184_s4, %s1184_s4 }
  0x30   :  { %p1191_p8 = por %p1190_p7, %p1189_p6 }
  0x32   :  { %p1192_p9 = pnand %p1191_p8, %p1185_p5 }
  0x34   :  { %1195 = shalt.err (!%p1192_p9)
}
  0x35   :  { %30 = dma.hbm_to_vmem [thread:$0]  %s1509_s0, 256, %s25_s10, [#allocation3], %s1296_s17, %s1296_s17, %s1297_s18  }
  0x36   :  { %s1196_s25 = scalar_lea.hbm %s1511_s2, 256 }
  0x37   :  { %p1197_p10 = scmp.ne.s32.totalorder %s1511_s2, %s1196_s25  ;;  %p1200_p11 = scmp.lt.u32.totalorder %s1196_s25, %s1511_s2 }
  0x39   :  { %p1202_p12 = pnand %p1200_p11, %p1197_p10 }
  0x3b   :  { %1205 = shalt.err (!%p1202_p12)
}
  0x3c   :  { %s1206_s28 = scalar_lea.vmem %s1389_s12, 256  ;;  %p1211_p0 = scmp.lt.s32.totalorder %s1389_s12, %s1389_s12 }
  0x3d   :  { %p1207_p13 = scmp.ne.s32.totalorder %s1389_s12, %s1206_s28  ;;  %p1212_p1 = scmp.lt.s32.totalorder %s1206_s28, %s1206_s28 }
  0x3f   :  { %p1213_p2 = por %p1212_p1, %p1211_p0 }
  0x41   :  { %p1214_p3 = pnand %p1213_p2, %p1207_p13 }
  0x43   :  { %1217 = shalt.err (!%p1214_p3)
}
  0x44   :  { %54 = dma.hbm_to_vmem [thread:$0]  %s1511_s2, 256, %s1389_s12, [#allocation6], %s1296_s17, %s1296_s17, %s1297_s18  }
  0x45   :  { %s1300_s10 = smov [#allocation10]   ;;  %s1218_s15 = scalar_lea.hbm %s1514_s5, 2048 }
  0x46   :  { %s74_s11 = sshll.u32 %s1300_s10, 4  ;;  %p1219_p4 = scmp.ne.s32.totalorder %s1514_s5, %s1218_s15  ;;  %s75_s11 = int_to_ptr.vmem [resolvable:$true] %s74_s11 }
  0x47   :  { %p1222_p5 = scmp.lt.u32.totalorder %s1218_s15, %s1514_s5 }
  0x49   :  { %p1224_p6 = pnand %p1222_p5, %p1219_p4 }
  0x4b   :  { %1227 = shalt.err (!%p1224_p6)
}
  0x4c   :  { %s1228_s4 = scalar_lea.vmem %s75_s11, 2048  ;;  %p1233_p8 = scmp.lt.s32.totalorder %s75_s11, %s75_s11 }
  0x4d   :  { %p1229_p7 = scmp.ne.s32.totalorder %s75_s11, %s1228_s4  ;;  %p1234_p9 = scmp.lt.s32.totalorder %s1228_s4, %s1228_s4 }
  0x4f   :  { %p1235_p10 = por %p1234_p9, %p1233_p8 }
  0x51   :  { %p1236_p11 = pnand %p1235_p10, %p1229_p7 }
  0x53   :  { %1239 = shalt.err (!%p1236_p11)
}
  0x54   :  { %80 = dma.hbm_to_vmem [thread:$0]  %s1514_s5, 2048, %s75_s11, [#allocation9], %s1296_s17, %s1296_s17, %s1297_s18  }
  0x55   :  { %1284 = dma.done.wait [#allocation3], 256  }
  0x56   :  { %1285 = vsyncadd [#allocation3], 4294967040 }
  0x57   :  { %1286 = dma.done.wait [#allocation6], 512  }
  0x58   :  { %1287 = vsyncadd [#allocation6], 4294966784 }
  0x59   :  { %1288 = dma.done.wait [#allocation9], 4096  }
  0x5a   :  { %1289 = vsyncadd [#allocation9], 4294963200  ;;  %v102_v0 = vld [vmem:[#allocation8] sm:$0xff]  ;;  %v103_v1 = vld [vmem:[#allocation8 + $0x8] sm:$0xff]  ;;  %v1301_v52 = vmov 0   ;;  %v290_v55 = vlaneseq  ;;  %vm651_vm0 = vcmask 1041409  }
  0x5b   :  { %v104_v2 = vld [vmem:[#allocation8 + $0x10] sm:$0xff]  ;;  %v1011_v3 = vpack.c.bf16 %v103_v1, %v102_v0  ;;  %v105_v4 = vld [vmem:[#allocation8 + $0x18] sm:$0xff]  ;;  %v193_v5 = vld [vmem:[#allocation10] sm:$0xff]  ;;  %1089 = vset.pattern.permute.xlu1 %v1301_v52  ;;  %1088 = vset.pattern.permute.xlu0 %v1301_v52  ;;  %v1302_v53 = vmov 1966171168   ;;  %vm653_vm1 = vcmask 1042434  }
  0x5c   :  { %v194_v6 = vld [vmem:[#allocation10 + $0x8] sm:$0xff]  ;;  %v1015_v7 = vpack.c.bf16 %v105_v4, %v104_v2  ;;  %v106_v9 = vld [vmem:[#allocation8 + $0x20] sm:$0xff]  ;;  %v195_v11 = vld [vmem:[#allocation10 + $0x10] sm:$0xff]  ;;  %v288_v54 = vunpack.c.l.s4 %v1302_v53  ;;  %v1442_v57 = vshrl.u32 %v290_v55, 7  ;;  %vm655_vm2 = vcmask 1043459  }
  0x5d   :  { %v1043_v8 = vpack.c.bf16 %v194_v6, %v193_v5  ;;  %v107_v10 = vld [vmem:[#allocation8 + $0x28] sm:$0xff]  ;;  %1012 = vmatprep.subr.bf16.mxu0 %v1011_v3  ;;  %v196_v12 = vld [vmem:[#allocation10 + $0x18] sm:$0xff]  ;;  %v197_v14 = vld [vmem:[#allocation10 + $0x20] sm:$0xff]  ;;  %vm657_vm3 = vcmask 1044484   ;;  %vm659_vm4 = vcmask 1045509   ;;  %vm661_vm5 = vcmask 1046534  }
  0x5e   :  { %1014 = vmatpush3.bf16.msra.mxu0 %v1011_v3  ;;  %v1047_v13 = vpack.c.bf16 %v196_v12, %v195_v11  ;;  %v198_v15 = vld [vmem:[#allocation10 + $0x28] sm:$0xff]  ;;  %v1019_v16 = vpack.c.bf16 %v107_v10, %v106_v9  ;;  %v108_v17 = vld [vmem:[#allocation8 + $0x30] sm:$0xff]  ;;  %v109_v18 = vld [vmem:[#allocation8 + $0x38] sm:$0xff]  ;;  %v289_v56 = vunpack.c.0.s8 %v288_v54  ;;  %v386_v0 = vsub.s32 0, %v1442_v57 }
  0x5f   :  { %1044 = vmatprep.subr.bf16.mxu1 %v1043_v8  ;;  %1016 = vmatprep.subr.bf16.mxu0 %v1015_v7  ;;  %v1051_v19 = vpack.c.bf16 %v198_v15, %v197_v14  ;;  %v199_v20 = vld [vmem:[#allocation10 + $0x30] sm:$0xff]  ;;  %v200_v21 = vld [vmem:[#allocation10 + $0x38] sm:$0xff]  ;;  %v1023_v22 = vpack.c.bf16 %v109_v18, %v108_v17  ;;  %v110_v23 = vld [vmem:[#allocation8 + $0x40] sm:$0xff]  ;;  %vm663_vm6 = vcmask 1047559   ;;  %vm676_vm7 = vcmask 64512  }
  0x60   :  { %1046 = vmatpush3.bf16.msra.mxu1 %v1043_v8  ;;  %v111_v24 = vld [vmem:[#allocation8 + $0x48] sm:$0xff]  ;;  %v1055_v25 = vpack.c.bf16 %v200_v21, %v199_v20  ;;  %v98_v26 = vld [vmem:[#allocation2] sm:$0xff]  ;;  %v201_v27 = vld [vmem:[#allocation10 + $0x40] sm:$0xff]  ;;  %v292_v58 = vsub.s32 %v289_v56, %v1442_v57  ;;  %vm1304_vm10 = vmmov 0  }
  0x61   :  { %1048 = vmatprep.subr.bf16.mxu1 %v1047_v13  ;;  %v202_v28 = vld [vmem:[#allocation10 + $0x48] sm:$0xff]  ;;  %963 = vmatprep.mubr.f32.mxu0 %v98_v26  ;;  %v100_v29 = vld [vmem:[#allocation5] sm:$0xff]  ;;  %v1027_v30 = vpack.c.bf16 %v111_v24, %v110_v23  ;;  %v112_v31 = vld [vmem:[#allocation8 + $0x50] sm:$0xff] }
  0x62   :  { %1018 = vmatpush3.bf16.msra.mxu0 %v1015_v7  ;;  %998 = vmatprep.mubr.f32.mxu1 %v100_v29  ;;  %v113_v32 = vld [vmem:[#allocation8 + $0x58] sm:$0xff]  ;;  %v1059_v33 = vpack.c.bf16 %v202_v28, %v201_v27  ;;  %v203_v34 = vld [vmem:[#allocation10 + $0x50] sm:$0xff]  ;;  %v114_v37 = vld [vmem:[#allocation8 + $0x60] sm:$0xff] }
  0x63   :  { %1020 = vmatprep.subr.bf16.mxu0 %v1019_v16  ;;  %v204_v35 = vld [vmem:[#allocation10 + $0x58] sm:$0xff]  ;;  %v1031_v36 = vpack.c.bf16 %v113_v32, %v112_v31  ;;  %v115_v38 = vld [vmem:[#allocation8 + $0x68] sm:$0xff]  ;;  %v205_v40 = vld [vmem:[#allocation10 + $0x60] sm:$0xff] }
  0x64   :  { %1050 = vmatpush3.bf16.msra.mxu1 %v1047_v13  ;;  %v1063_v39 = vpack.c.bf16 %v204_v35, %v203_v34  ;;  %v206_v41 = vld [vmem:[#allocation10 + $0x68] sm:$0xff]  ;;  %v1035_v42 = vpack.c.bf16 %v115_v38, %v114_v37  ;;  %v116_v43 = vld [vmem:[#allocation8 + $0x70] sm:$0xff]  ;;  %v117_v44 = vld [vmem:[#allocation8 + $0x78] sm:$0xff] }
  0x65   :  { %1052 = vmatprep.subr.bf16.mxu1 %v1051_v19  ;;  %v1067_v45 = vpack.c.bf16 %v206_v41, %v205_v40  ;;  %v207_v46 = vld [vmem:[#allocation10 + $0x70] sm:$0xff]  ;;  %v208_v47 = vld [vmem:[#allocation10 + $0x78] sm:$0xff]  ;;  %v1039_v48 = vpack.c.bf16 %v117_v44, %v116_v43  ;;  %v101_v51 = vld [vmem:[#allocation5 + $0x8] sm:$0xff] }
  0x66   :  { %1022 = vmatpush3.bf16.msra.mxu0 %v1019_v16  ;;  %v1071_v49 = vpack.c.bf16 %v208_v47, %v207_v46  ;;  %v99_v50 = vld [vmem:[#allocation2 + $0x8] sm:$0xff] }
  0x67   :  { %1024 = vmatprep.subr.bf16.mxu0 %v1023_v22 }
  0x68   :  { %1054 = vmatpush3.bf16.msra.mxu1 %v1051_v19 }
  0x69   :  { %1056 = vmatprep.subr.bf16.mxu1 %v1055_v25 }
  0x6a   :  { %1026 = vmatpush3.bf16.msra.mxu0 %v1023_v22 }
  0x6b   :  { %1028 = vmatprep.subr.bf16.mxu0 %v1027_v30 }
  0x6c   :  { %1058 = vmatpush3.bf16.msra.mxu1 %v1055_v25 }
  0x6d   :  { %1060 = vmatprep.subr.bf16.mxu1 %v1059_v33 }
  0x6e   :  { %1030 = vmatpush3.bf16.msra.mxu0 %v1027_v30 }
  0x6f   :  { %1032 = vmatprep.subr.bf16.mxu0 %v1031_v36 }
  0x70   :  { %1062 = vmatpush3.bf16.msra.mxu1 %v1059_v33 }
  0x71   :  { %1064 = vmatprep.subr.bf16.mxu1 %v1063_v39 }
  0x72   :  { %1034 = vmatpush3.bf16.msra.mxu0 %v1031_v36 }
  0x73   :  { %1036 = vmatprep.subr.bf16.mxu0 %v1035_v42 }
  0x74   :  { %1066 = vmatpush3.bf16.msra.mxu1 %v1063_v39 }
  0x75   :  { %1068 = vmatprep.subr.bf16.mxu1 %v1067_v45 }
  0x76   :  { %1038 = vmatpush3.bf16.msra.mxu0 %v1035_v42 }
  0x77   :  { %1040 = vmatprep.subr.bf16.mxu0 %v1039_v48 }
  0x78   :  { %1070 = vmatpush3.bf16.msra.mxu1 %v1067_v45 }
  0x79   :  { %1072 = vmatprep.subr.bf16.mxu1 %v1071_v49 }
  0x7a   :  { %1042 = vmatpush3.bf16.msra.mxu0 %v1039_v48 }
  0x7c   :  { %1074 = vmatpush3.bf16.msra.mxu1 %v1071_v49 }
  0x7d   :  { %964 = vmatmul.mubr.f32.vlgmr.msra.gmra.mrb[0].mxu0 %v99_v50 }
  0x7f   :  { %999 = vmatmul.mubr.f32.vlgmr.msra.gmra.mrb[0].mxu1 %v101_v51 }
 0x150   :  { %v965_v59 = vpop.f32.mrb[0].mxu0 }
 0x151   :  { %v335_v60 = vcombine.high %v965_v59, %v965_v59  ;;  %v342_v61 = vrot.slane %v965_v59, %v292_v58  ;;  %v184_v62 = vpop.f32.mrb[1].mxu0 }
 0x152   :  { %v1000_v63 = vpop.f32.mrb[0].mxu1  ;;  %v286_v1 = vcombine.high %v184_v62, %v184_v62  ;;  %v293_v2 = vrot.slane %v184_v62, %v292_v58 }
 0x153   :  { %v275_v3 = vpop.f32.mrb[1].mxu1  ;;  %v349_v4 = vrot.slane %v335_v60, %v292_v58  ;;  %v350_v5 = vcombine.high %v342_v61, %v342_v61  ;;  %v358_v6 = vrot.slane %v342_v61, %v292_v58  ;;  %v886_v60 = vld [vmem:[%s1515_s6] ss:$0 sm:$0xff] }
 0x154   :  { %v300_v7 = vrot.slane %v286_v1, %v292_v58  ;;  %v301_v8 = vcombine.high %v293_v2, %v293_v2  ;;  %v309_v9 = vrot.slane %v293_v2, %v292_v58 }
 0x155   :  { %v351_v10 = vcombine.high %v349_v4, %v349_v4  ;;  %v365_v11 = vrot.slane %v349_v4, %v292_v58  ;;  %v372_v12 = vrot.slane %v350_v5, %v292_v58  ;;  %v380_v13 = vcombine.high %v358_v6, %v358_v6 }
 0x156   :  { %v419_v14 = vrot.slane %v358_v6, %v386_v0  ;;  %v302_v15 = vcombine.high %v300_v7, %v300_v7  ;;  %v316_v16 = vrot.slane %v300_v7, %v292_v58  ;;  %v323_v17 = vrot.slane %v301_v8, %v292_v58 }
 0x157   :  { %v379_v18 = vrot.slane %v351_v10, %v292_v58  ;;  %v381_v19 = vcombine.high %v365_v11, %v365_v11  ;;  %v382_v20 = vcombine.high %v372_v12, %v372_v12  ;;  %v423_v21 = vrot.slane %v372_v12, %v386_v0 }
 0x158   :  { %v427_v22 = vrot.slane %v380_v13, %v386_v0  ;;  %v435_v23 = vrot.slane %v365_v11, %v386_v0  ;;  %v330_v24 = vrot.slane %v302_v15, %v292_v58  ;;  %v331_v25 = vcombine.high %v309_v9, %v309_v9 }
 0x159   :  { %v383_v26 = vcombine.high %v379_v18, %v379_v18  ;;  %v431_v27 = vrot.slane %v382_v20, %v386_v0  ;;  %v439_v28 = vrot.slane %v379_v18, %v386_v0  ;;  %v443_v29 = vrot.slane %v381_v19, %v386_v0 }
 0x15a   :  { %v332_v30 = vcombine.high %v316_v16, %v316_v16  ;;  %v333_v31 = vcombine.high %v323_v17, %v323_v17  ;;  %v334_v32 = vcombine.high %v330_v24, %v330_v24  ;;  %v387_v33 = vrot.slane %v309_v9, %v386_v0 }
 0x15b   :  { %v447_v34 = vrot.slane %v383_v26, %v386_v0  ;;  %v391_v35 = vrot.slane %v323_v17, %v386_v0  ;;  %v395_v36 = vrot.slane %v331_v25, %v386_v0  ;;  %v403_v37 = vrot.slane %v316_v16, %v386_v0 }
 0x15c   :  { %v399_v38 = vrot.slane %v333_v31, %v386_v0  ;;  %v407_v39 = vrot.slane %v330_v24, %v386_v0  ;;  %v411_v40 = vrot.slane %v332_v30, %v386_v0  ;;  %v415_v41 = vrot.slane %v334_v32, %v386_v0  ;;  %v887_v30 = vld [vmem:[%s1512_s3] ss:$0 sm:$0xff] }
 0x15d   :  { %v472_v42 = vadd.f32 %v1000_v63, %v419_v14  ;;  %v464_v43 = vadd.f32 %v387_v33, %v275_v3  ;;  %v473_v44 = vadd.f32 %v1000_v63, %v423_v21  ;;  %v465_v45 = vadd.f32 %v391_v35, %v275_v3 }
 0x15e   :  { %v474_v46 = vadd.f32 %v1000_v63, %v427_v22  ;;  %v466_v47 = vadd.f32 %v395_v36, %v275_v3  ;;  %v476_v48 = vadd.f32 %v1000_v63, %v435_v23  ;;  %v468_v49 = vadd.f32 %v403_v37, %v275_v3 }
 0x15f   :  { %1090 = vtanh.f32 %v472_v42  ;;  %v475_v50 = vadd.f32 %v1000_v63, %v431_v27  ;;  %v467_v51 = vadd.f32 %v399_v38, %v275_v3  ;;  %v477_v52 = vadd.f32 %v1000_v63, %v439_v28 }
 0x160   :  { %1092 = vtanh.f32 %v464_v43  ;;  %v469_v53 = vadd.f32 %v407_v39, %v275_v3  ;;  %v478_v54 = vadd.f32 %v1000_v63, %v443_v29  ;;  %v470_v56 = vadd.f32 %v411_v40, %v275_v3  ;;  %v888_v29 = vld [vmem:[%s1512_s3 + $0x1] ss:$0 sm:$0xff]  ;;  %s1305_s3 = smov [#allocation12]  }
 0x161   :  { %1094 = vtanh.f32 %v473_v44  ;;  %v479_v58 = vadd.f32 %v1000_v63, %v447_v34  ;;  %v471_v59 = vadd.f32 %v415_v41, %v275_v3  ;;  %v554_v39 = vand.u32 127, %v290_v55  ;;  %s868_s25 = sshll.u32 %s1305_s3, 4  ;;  %s869_s25 = int_to_ptr.vmem [resolvable:$true] %s868_s25 }
 0x162   :  { %1096 = vtanh.f32 %v465_v45  ;;  %s1240_s26 = scalar_lea.vmem %s869_s25, 256  ;;  %p1245_p13 = scmp.lt.s32.totalorder %s869_s25, %s869_s25 }
 0x163   :  { %1098 = vtanh.f32 %v474_v46  ;;  %v589_v42 = vsub.s32 %v554_v39, %v1442_v57  ;;  %p1241_p12 = scmp.ne.s32.totalorder %s869_s25, %s1240_s26  ;;  %p1246_p0 = scmp.lt.s32.totalorder %s1240_s26, %s1240_s26 }
 0x164   :  { %1100 = vtanh.f32 %v466_v47 }
 0x165   :  { %1102 = vtanh.f32 %v476_v48  ;;  %p1247_p1 = por %p1246_p0, %p1245_p13 }
 0x166   :  { %1104 = vtanh.f32 %v468_v49 }
 0x167   :  { %1106 = vtanh.f32 %v475_v50  ;;  %p1248_p2 = pnand %p1247_p1, %p1241_p12 }
 0x168   :  { %1108 = vtanh.f32 %v467_v51 }
 0x169   :  { %v1091_v61 = vpop.eup %1090  ;;  %1110 = vtanh.f32 %v477_v52 }
 0x16a   :  { %v1093_v62 = vpop.eup %1092  ;;  %v511_v0 = vmul.f32 %v1091_v61, %v886_v60  ;;  %1112 = vtanh.f32 %v469_v53 }
 0x16b   :  { %v1095_v1 = vpop.eup %1094  ;;  %v503_v2 = vmul.f32 %v1093_v62, %v886_v60  ;;  %1114 = vtanh.f32 %v478_v54 }
 0x16c   :  { %v1097_v4 = vpop.eup %1096  ;;  %535 = vadd.xlane.f32.xlu1 %v511_v0  ;;  %v512_v63 = vmul.f32 %v1095_v1, %v886_v60  ;;  %1116 = vtanh.f32 %v470_v56 }
 0x16d   :  { %519 = vadd.xlane.f32.xlu0 %v503_v2  ;;  %v1099_v3 = vpop.eup %1098  ;;  %v504_v5 = vmul.f32 %v1097_v4, %v886_v60  ;;  %1118 = vtanh.f32 %v479_v58 }
 0x16e   :  { %v1101_v6 = vpop.eup %1100  ;;  %v513_v7 = vmul.f32 %v1099_v3, %v886_v60  ;;  %1120 = vtanh.f32 %v471_v59 }
 0x16f   :  { %v1103_v8 = vpop.eup %1102  ;;  %v505_v9 = vmul.f32 %v1101_v6, %v886_v60 }
 0x170   :  { %537 = vadd.xlane.f32.xlu1 %v512_v63  ;;  %v1105_v10 = vpop.eup %1104  ;;  %v515_v11 = vmul.f32 %v1103_v8, %v886_v60 }
 0x171   :  { %521 = vadd.xlane.f32.xlu0 %v504_v5  ;;  %v1107_v12 = vpop.eup %1106  ;;  %v507_v13 = vmul.f32 %v1105_v10, %v886_v60 }
 0x172   :  { %v1109_v14 = vpop.eup %1108  ;;  %v514_v15 = vmul.f32 %v1107_v12, %v886_v60 }
 0x173   :  { %v1111_v16 = vpop.eup %1110  ;;  %v506_v17 = vmul.f32 %v1109_v14, %v886_v60 }
 0x174   :  { %539 = vadd.xlane.f32.xlu1 %v513_v7  ;;  %v1113_v18 = vpop.eup %1112  ;;  %v516_v19 = vmul.f32 %v1111_v16, %v886_v60 }
 0x175   :  { %523 = vadd.xlane.f32.xlu0 %v505_v9  ;;  %v1115_v20 = vpop.eup %1114  ;;  %v508_v21 = vmul.f32 %v1113_v18, %v886_v60 }
 0x176   :  { %v1117_v22 = vpop.eup %1116  ;;  %v517_v23 = vmul.f32 %v1115_v20, %v886_v60 }
 0x177   :  { %v1119_v24 = vpop.eup %1118  ;;  %v509_v25 = vmul.f32 %v1117_v22, %v886_v60 }
 0x178   :  { %543 = vadd.xlane.f32.xlu1 %v515_v11  ;;  %v1121_v26 = vpop.eup %1120  ;;  %v518_v27 = vmul.f32 %v1119_v24, %v886_v60 }
 0x179   :  { %527 = vadd.xlane.f32.xlu0 %v507_v13  ;;  %v510_v28 = vmul.f32 %v1121_v26, %v886_v60 }
 0x17c   :  { %541 = vadd.xlane.f32.xlu1 %v514_v15 }
 0x17d   :  { %525 = vadd.xlane.f32.xlu0 %v506_v17 }
 0x180   :  { %545 = vadd.xlane.f32.xlu1 %v516_v19 }
 0x181   :  { %529 = vadd.xlane.f32.xlu0 %v508_v21 }
 0x184   :  { %547 = vadd.xlane.f32.xlu1 %v517_v23 }
 0x185   :  { %531 = vadd.xlane.f32.xlu0 %v509_v25 }
 0x188   :  { %549 = vadd.xlane.f32.xlu1 %v518_v27 }
 0x189   :  { %533 = vadd.xlane.f32.xlu0 %v510_v28 }
 0x199   :  { %567 = vperm.xlu1 %1089, %v888_v29  }
 0x19f   :  { %564 = vperm.xlu0 %1088, %v887_v30  }
 0x1f9   :  { %v536_v31 = vpop.xlane.xlu1 %535 }
 0x1fa   :  { %v520_v32 = vpop.xlane.xlu0 %519  ;;  %v622_v47 = vrot.slane %v536_v31, %v589_v42  ;;  %v701_v31 = vld [vmem:[#allocation7] sm:$0xff] }
 0x1fb   :  { %v590_v56 = vrot.slane %v520_v32, %v589_v42  ;;  %v702_v32 = vld [vmem:[#allocation7 + $0x8] sm:$0xff] }
 0x1fd   :  { %v538_v33 = vpop.xlane.xlu1 %537 }
 0x1fe   :  { %v522_v34 = vpop.xlane.xlu0 %521  ;;  %v626_v44 = vrot.slane %v538_v33, %v589_v42  ;;  %v1303_v33 = vmov 0.0  }
 0x1ff   :  { %v594_v52 = vrot.slane %v522_v34, %v589_v42  ;;  %1001 = vmatprep.subr.mxu0 %v1303_v33  ;;  %1003 = vmatprep.mubr.msk.f32.mxu0 %vm1304_vm10, %v1303_v33 }
 0x200   :  { %v665_v50 = vsel %vm651_vm0, %v626_v44, %v622_v47  ;;  %1002 = vmatpush3.msra.mxu0 %v701_v31  ;;  %1006 = vmatprep.subr.mxu1 %v1303_v33 }
 0x201   :  { %v540_v35 = vpop.xlane.xlu1 %539  ;;  %v652_v0 = vsel %vm651_vm0, %v594_v52, %v590_v56  ;;  %1007 = vmatpush3.msra.mxu1 %v702_v32  ;;  %1008 = vmatprep.mubr.msk.f32.mxu1 %vm1304_vm10, %v1303_v33 }
 0x202   :  { %v524_v36 = vpop.xlane.xlu0 %523  ;;  %v630_v46 = vrot.slane %v540_v35, %v589_v42 }
 0x203   :  { %v598_v53 = vrot.slane %v524_v36, %v589_v42 }
 0x204   :  { %v666_v55 = vsel %vm653_vm1, %v630_v46, %v665_v50 }
 0x205   :  { %v544_v37 = vpop.xlane.xlu1 %543  ;;  %v654_v2 = vsel %vm653_vm1, %v598_v53, %v652_v0 }
 0x206   :  { %v528_v38 = vpop.xlane.xlu0 %527  ;;  %v638_v58 = vrot.slane %v544_v37, %v589_v42 }
 0x207   :  { %v606_v8 = vrot.slane %v528_v38, %v589_v42 }
 0x209   :  { %v542_v40 = vpop.xlane.xlu1 %541 }
 0x20a   :  { %v526_v41 = vpop.xlane.xlu0 %525  ;;  %v634_v48 = vrot.slane %v542_v40, %v589_v42 }
 0x20b   :  { %v602_v59 = vrot.slane %v526_v41, %v589_v42 }
 0x20c   :  { %v667_v57 = vsel %vm655_vm2, %v634_v48, %v666_v55 }
 0x20d   :  { %v546_v43 = vpop.xlane.xlu1 %545  ;;  %v668_v1 = vsel %vm657_vm3, %v638_v58, %v667_v57  ;;  %v656_v3 = vsel %vm655_vm2, %v602_v59, %v654_v2 }
 0x20e   :  { %v530_v45 = vpop.xlane.xlu0 %529  ;;  %v642_v54 = vrot.slane %v546_v43, %v589_v42  ;;  %v658_v13 = vsel %vm657_vm3, %v606_v8, %v656_v3 }
 0x20f   :  { %v610_v5 = vrot.slane %v530_v45, %v589_v42 }
 0x210   :  { %v669_v4 = vsel %vm659_vm4, %v642_v54, %v668_v1 }
 0x211   :  { %v548_v49 = vpop.xlane.xlu1 %547  ;;  %v660_v15 = vsel %vm659_vm4, %v610_v5, %v658_v13 }
 0x212   :  { %v532_v51 = vpop.xlane.xlu0 %531  ;;  %v646_v60 = vrot.slane %v548_v49, %v589_v42 }
 0x213   :  { %v614_v9 = vrot.slane %v532_v51, %v589_v42 }
 0x214   :  { %v670_v7 = vsel %vm661_vm5, %v646_v60, %v669_v4 }
 0x215   :  { %v550_v61 = vpop.xlane.xlu1 %549  ;;  %v662_v17 = vsel %vm661_vm5, %v614_v9, %v660_v15 }
 0x216   :  { %v650_v62 = vrot.slane %v550_v61, %v589_v42  ;;  %v534_v63 = vpop.xlane.xlu0 %533 }
 0x217   :  { %v618_v11 = vrot.slane %v534_v63, %v589_v42 }
 0x218   :  { %v671_v10 = vsel %vm663_vm6, %v650_v62, %v670_v7 }
 0x219   :  { %v568_v6 = vpop.permute.xlu1 %567  ;;  %v664_v18 = vsel %vm663_vm6, %v618_v11, %v662_v17 }
 0x21a   :  { %vm570_vm8 = vcmp.lt.s32.totalorder %v554_v39, %v568_v6 }
 0x21b   :  { %v675_v12 = vsel %vm570_vm8, %v671_v10, -1000000.0 }
 0x21c   :  { %v680_v14 = vsel %vm676_vm7, %v675_v12, -inf }
 0x21d   :  { %681 = vmax.xlane.f32.xlu0 %v680_v14 }
 0x21e   :  { %v565_v16 = vpop.permute.xlu0 %564 }
 0x21f   :  { %vm569_vm9 = vcmp.lt.s32.totalorder %v554_v39, %v565_v16 }
 0x220   :  { %v674_v19 = vsel %vm569_vm9, %v664_v18, -1000000.0 }
 0x221   :  { %v677_v20 = vsel %vm676_vm7, %v674_v19, -inf }
 0x222   :  { %678 = vmax.xlane.f32.xlu1 %v677_v20 }
 0x2aa   :  { %v682_v21 = vpop.xlane.xlu0 %681 }
 0x2ab   :  { %v684_v22 = vsub.f32 %v675_v12, %v682_v21 }
 0x2ad   :  { %v687_v25 = vmul.f32 1.442695, %v684_v22 }
 0x2af   :  { %v679_v23 = vpop.xlane.xlu1 %678 }
 0x2b0   :  { %v683_v24 = vsub.f32 %v674_v19, %v679_v23 }
 0x2b2   :  { %v685_v26 = vmul.f32 1.442695, %v683_v24 }
 0x2b4   :  { %1122 = vpow2.f32 %v685_v26 }
 0x2b5   :  { %1124 = vpow2.f32 %v687_v25 }
 0x2be   :  { %v1123_v27 = vpop.eup %1122 }
 0x2bf   :  { %v689_v28 = vsel %vm676_vm7, %v1123_v27, 0.0  ;;  %v1125_v29 = vpop.eup %1124 }
 0x2c0   :  { %690 = vadd.xlane.f32.xlu1 %v689_v28  ;;  %v692_v30 = vsel %vm676_vm7, %v1125_v29, 0.0 }
 0x2c4   :  { %693 = vadd.xlane.f32.xlu1 %v692_v30 }
 0x34d   :  { %v691_v34 = vpop.xlane.xlu1 %690 }
 0x34e   :  { %1126 = vrcp.f32 %v691_v34 }
 0x351   :  { %v694_v35 = vpop.xlane.xlu1 %693 }
 0x352   :  { %1128 = vrcp.f32 %v694_v35 }
 0x358   :  { %v1127_v36 = vpop.eup %1126 }
 0x359   :  { %v697_v37 = vmul.f32 %v1127_v36, %v1123_v27 }
 0x35b   :  { %699 = vst.msk [vmem:[#allocation12] sm:$0xff] %vm676_vm7, %v697_v37  ;;  %1004 = vmatmul.mubr.msk.f32.vlgmr.msra.gmra.mrb[2].mxu0 %vm676_vm7, %v697_v37 }
 0x35c   :  { %v1129_v38 = vpop.eup %1128 }
 0x35d   :  { %v698_v39 = vmul.f32 %v1129_v38, %v1125_v29 }
 0x35f   :  { %700 = vst.msk [vmem:[#allocation12 + $0x8] sm:$0xff] %vm676_vm7, %v698_v39  ;;  %1009 = vmatmul.mubr.msk.f32.vlgmr.msra.gmra.mrb[2].mxu1 %vm676_vm7, %v698_v39 }
 0x360   :  { %1251 = shalt.err (!%p1248_p2)
}
 0x361   :  { %s1252_s1 = scalar_lea.hbm %s1517_s8, 256 }
 0x362   :  { %p1253_p3 = scmp.ne.s32.totalorder %s1517_s8, %s1252_s1  ;;  %p1256_p4 = scmp.lt.u32.totalorder %s1252_s1, %s1517_s8 }
 0x364   :  { %p1258_p5 = pnand %p1256_p4, %p1253_p3 }
 0x366   :  { %1261 = shalt.err (!%p1258_p5)
}
 0x367   :  { %874 = dma.vmem_to_hbm [thread:$0]  %s869_s25, 256, %s1517_s8, [#allocation13], %s1296_s17, %s1296_s17, %s1297_s18  }
 0x368   :  { %s1306_s14 = smov [#allocation11]  }
 0x369   :  { %s856_s15 = sshll.u32 %s1306_s14, 4  ;;  %s857_s15 = int_to_ptr.vmem [resolvable:$true] %s856_s15 }
 0x36a   :  { %s1262_s16 = scalar_lea.vmem %s857_s15, 256  ;;  %p1267_p7 = scmp.lt.s32.totalorder %s857_s15, %s857_s15 }
 0x36b   :  { %p1263_p6 = scmp.ne.s32.totalorder %s857_s15, %s1262_s16  ;;  %p1268_p8 = scmp.lt.s32.totalorder %s1262_s16, %s1262_s16 }
 0x36d   :  { %p1269_p9 = por %p1268_p8, %p1267_p7 }
 0x36f   :  { %p1270_p10 = pnand %p1269_p9, %p1263_p6 }
 0x42e   :  { %v772_v40 = vpop.f32.mrb[2].mxu0 }
 0x42f   :  { %849 = vst [vmem:[#allocation11] sm:$0xff] %v772_v40  ;;  %v1005_v41 = vpop.f32.mrb[3].mxu0 }
 0x432   :  { %v845_v42 = vpop.f32.mrb[2].mxu1 }
 0x433   :  { %850 = vst [vmem:[#allocation11 + $0x8] sm:$0xff] %v845_v42  ;;  %v1010_v43 = vpop.f32.mrb[3].mxu1 }
 0x434   :  { %1273 = shalt.err (!%p1270_p10)
}
 0x435   :  { %s1274_s8 = scalar_lea.hbm %s1516_s7, 256 }
 0x436   :  { %p1275_p11 = scmp.ne.s32.totalorder %s1516_s7, %s1274_s8  ;;  %p1278_p12 = scmp.lt.u32.totalorder %s1274_s8, %s1516_s7 }
 0x438   :  { %p1280_p13 = pnand %p1278_p12, %p1275_p11 }
 0x43a   :  { %1283 = shalt.err (!%p1280_p13)
}
 0x43b   :  { %862 = dma.vmem_to_hbm [thread:$0]  %s857_s15, 256, %s1516_s7, [#allocation4], %s1296_s17, %s1296_s17, %s1297_s18  }
 0x43c   :  { %1290 = dma.done.wait [#allocation4], 256  }
 0x43d   :  { %1291 = vsyncadd [#allocation4], 4294967040 }
 0x43e   :  { %1292 = dma.done.wait [#allocation13], 256  }
 0x43f   :  { %1293 = vsyncadd [#allocation13], 4294967040 }
 0x440   :  { %881 = vsyncpa [#allocation3], 1 }
 0x441   :  { %882 = vsyncpa [#allocation6], 1 }
 0x442   :  { %883 = vsyncpa [#allocation9], 1 }
 0x443   :  { %884 = vsyncpa [#allocation4], 1 }
 0x444   :  { %885 = vsyncpa [#allocation13], 1 }

</bundles_post_ra>
